<compile_context>
chip_gen: v7x
topology: tpu7x:2x2x1
jax: 0.10.0
libtpu: 0.0.40
codegen_flags: <defaults>
</compile_context>

<pallas_src>
import functools

import jax
import jax.numpy as jnp
from jax.experimental import pallas as pl
from jax.experimental.pallas import tpu as pltpu

# Older JAX releases exposed the Mosaic params under a different name.
_CompilerParams = getattr(pltpu, "CompilerParams", None)
if _CompilerParams is None:  # pragma: no cover
    _CompilerParams = pltpu.TPUCompilerParams


def _round_up(x, m):
    return ((x + m - 1) // m) * m


def _choose_time_tile(T, c_in, c_out, n_layers, K, compute_dtype, override=None):
    """Pick a time-tile size TM (multiple of 8) that fits a conservative VMEM budget."""
    if override is not None:
        tm = int(override)
    else:
        bpe = jnp.dtype(compute_dtype).itemsize
        budget = 20 * 1024 * 1024  # conservative: fits v7x 64 MiB even double-buffered
        weights = 2 * bpe * (K * c_in * c_out + max(n_layers - 1, 1) * K * c_out * c_out)
        per_row = (
            3 * bpe * c_in        # double-buffered input tile + window scratch
            + 2 * 4 * c_out       # double-buffered f32 output tile
            + 2 * bpe * c_out     # two intermediate activation scratch buffers
        )
        tm = (budget - weights) // max(per_row, 1)
        tm = max(256, min(int(tm), 4096))
    tm = min(tm, _round_up(T, 8))
    tm = max(8, (tm // 8) * 8)
    return int(tm)


def _make_fused_conv_relu_kernel(n_layers, K, TM, HP, compute_dtype):
    """Fused n_layers x (valid Conv1d + ReLU) over one (batch, time-tile) block."""

    def kernel(x_ref, halo_ref, w0_ref, wr_ref, b_ref, o_ref,
               xwin_ref, buf_a_ref, buf_b_ref):
        # x_ref:    (1, TM, C_in)          current time tile
        # halo_ref: (1, 1, HP, C_in)       next HP rows (time halo)
        # w0_ref:   (K, C_in, CP)          layer-0 weights
        # wr_ref:   (max(n_layers-1,1), K, CP, CP)   remaining layers' weights
        # b_ref:    (n_layers, 1, CP)      biases (f32)
        # o_ref:    (1, TM, CP)            final-layer output tile
        # xwin_ref: (TM+HP, C_in) scratch; buf_*: (TM+(n_layers-1)(K-1), CP) scratch

        # Assemble the contiguous halo'd input window for this tile.
        xwin_ref[0:TM, :] = x_ref[0]
        xwin_ref[TM:TM + HP, :] = halo_ref[0, 0]

        bufs = (buf_a_ref, buf_b_ref)
        src_ref = xwin_ref
        cp = w0_ref.shape[-1]

        # Layer l consumes rows_out + (K-1) rows and produces rows_out rows.
        rows_out = TM + (n_layers - 1) * (K - 1)
        for l in range(n_layers):                      # static unroll over layers
            acc = jnp.zeros((rows_out, cp), jnp.float32)
            for k in range(K):                         # static unroll over taps
                lhs = src_ref[k:k + rows_out, :]       # static ref slice (no full copy)
                w_k = w0_ref[k] if l == 0 else wr_ref[l - 1, k]
                acc = acc + jnp.dot(lhs, w_k, preferred_element_type=jnp.float32)
            acc = jnp.maximum(acc + b_ref[l], 0.0)     # f32 bias + ReLU epilogue
            if l == n_layers - 1:
                o_ref[0] = acc.astype(o_ref.dtype)
            else:
                dst = bufs[l % 2]
                dst[0:rows_out, :] = acc.astype(compute_dtype)
                src_ref = dst
                rows_out = rows_out - (K - 1)

    return kernel


def conv1d_stack_pallas(x_main, x_halo, w0, w_rest, b_all, *,
                        n_layers, K, tm, hp, out_dtype, compute_dtype):
    """One pallas_call running the whole fused conv+ReLU stack, tiled over (B, time)."""
    B, T_main, C_in = x_main.shape
    NT = T_main // tm
    CP = w0.shape[-1]
    rows0 = tm + (n_layers - 1) * (K - 1)

    kernel = _make_fused_conv_relu_kernel(n_layers, K, tm, hp, compute_dtype)

    grid_spec = pltpu.PrefetchScalarGridSpec(
        num_scalar_prefetch=0,
        grid=(B, NT),
        in_specs=[
            pl.BlockSpec((1, tm, C_in), lambda b, t: (b, t, 0)),
            pl.BlockSpec((1, 1, hp, C_in), lambda b, t: (b, t, 0, 0)),
            # Weights / biases: constant index maps -> fetched once, stay resident.
            pl.BlockSpec(w0.shape, lambda b, t: (0, 0, 0)),
            pl.BlockSpec(w_rest.shape, lambda b, t: (0, 0, 0, 0)),
            pl.BlockSpec(b_all.shape, lambda b, t: (0, 0, 0)),
        ],
        out_specs=pl.BlockSpec((1, tm, CP), lambda b, t: (b, t, 0)),
        scratch_shapes=[
            pltpu.VMEM((tm + hp, C_in), compute_dtype),   # halo'd input window
            pltpu.VMEM((rows0, CP), compute_dtype),       # ping
            pltpu.VMEM((rows0, CP), compute_dtype),       # pong
        ],
    )
    return pl.pallas_call(
        kernel,
        out_shape=jax.ShapeDtypeStruct((B, T_main, CP), out_dtype),
        grid_spec=grid_spec,
        compiler_params=_CompilerParams(
            dimension_semantics=("parallel", "parallel"),
            vmem_limit_bytes=48 * 1024 * 1024,
        ),
    )(x_main, x_halo, w0, w_rest, b_all)


class Conv1dPallas:
    """Pallas port of the PyTorch Conv1d module (pad='same' path)."""

    def __init__(self, d_input, d_hidden, n_layers, w_context, pad="same",
                 key=None, compute_dtype=jnp.float32, time_tile=None):
        assert n_layers >= 1
        self.n_layers = n_layers
        self.d_input = d_input
        self.d_hidden = d_hidden
        self.w_context = w_context
        self.pad = pad
        self.compute_dtype = compute_dtype
        self.time_tile = time_tile
        if key is None:
            key = jax.random.PRNGKey(0)
        self.weights = []
        self.biases = []
        c_in = d_input
        for _ in range(n_layers):
            key, kw, kb = jax.random.split(key, 3)
            fan_in = c_in * w_context
            bound = 1.0 / jnp.sqrt(jnp.float32(fan_in))
            # Stored as (K, C_in, C_out); PyTorch stores (C_out, C_in, K).
            w = jax.random.uniform(kw, (w_context, c_in, d_hidden),
                                   jnp.float32, -bound, bound)
            b = jax.random.uniform(kb, (d_hidden,), jnp.float32, -bound, bound)
            self.weights.append(w)
            self.biases.append(b)
            c_in = d_hidden

    def __call__(self, feats, feat_lengths):
        # feats: (B, T, d_input); returns ((B, T, d_hidden), feat_lengths).
        assert self.pad == "same"
        # TODO(synk): the pad!='same' branch in the PyTorch module references
        # undefined attrs (self.padding / self.subsample) and cannot run; only
        # the 'same' path is implemented.
        B, T, C_in = feats.shape
        K = self.w_context
        H = self.n_layers * (K - 1)          # true receptive-field halo of the stack
        HP = max(H, 1)                       # avoid zero-size arrays when K == 1

        tm = _choose_time_tile(T, C_in, self.d_hidden, self.n_layers, K,
                               self.compute_dtype, self.time_tile)
        NT = -(-T // tm)
        T_main = NT * tm

        x = feats.astype(self.compute_dtype)
        # TODO(synk): this trailing zero pad (tile rounding + halo) could be
        # folded into the kernel via masking of the last time tile.
        x_pad = jnp.pad(x, ((0, 0), (0, T_main - T + HP), (0, 0)))
        x_main = x_pad[:, :T_main, :]
        # Per-tile halo: rows [(t+1)*tm, (t+1)*tm + HP) -> shape (B, NT, HP, C_in).
        starts = (jnp.arange(NT) + 1) * tm
        hidx = starts[:, None] + jnp.arange(HP)[None, :]
        x_halo = x_pad[:, hidx, :]

        w0 = self.weights[0].astype(self.compute_dtype)
        if self.n_layers > 1:
            w_rest = jnp.stack(self.weights[1:]).astype(self.compute_dtype)
        else:
            w_rest = jnp.zeros((1, K, self.d_hidden, self.d_hidden), self.compute_dtype)
        b_all = jnp.stack(self.biases).reshape(self.n_layers, 1, self.d_hidden)
        b_all = b_all.astype(jnp.float32)

        out_full = conv1d_stack_pallas(
            x_main, x_halo, w0, w_rest, b_all,
            n_layers=self.n_layers, K=K, tm=tm, hp=HP,
            out_dtype=feats.dtype, compute_dtype=self.compute_dtype)

        outputs = out_full[:, :T, :]
        output_lengths = feat_lengths
        return outputs, output_lengths


def _reference(feats, weights, biases, n_layers, w_context):
    """Pure-JAX f32 reference of the module's math (pad -> valid convs + ReLU -> slice)."""
    B, T, _ = feats.shape
    x = jnp.pad(feats, ((0, 0), (0, n_layers * w_context), (0, 0)))
    for w, b in zip(weights, biases):
        K, _, C_out = w.shape
        T_out = x.shape[1] - K + 1
        acc = jnp.zeros((B, T_out, C_out), jnp.float32)
        for k in range(K):
            acc = acc + jnp.einsum("btc,co->bto", x[:, k:k + T_out, :], w[k])
        x = jnp.maximum(acc + b, 0.0)
    return x[:, :T, :]


if __name__ == "__main__":
    key = jax.random.PRNGKey(0)
    kx1, kx2, kp1, kp2 = jax.random.split(key, 4)

    # ---- Test 1: default tiling (single time tile), f32 compute --------------
    B, T, d_in, d_hid, n_layers, K = 2, 16, 8, 16, 2, 3
    feats = jax.random.normal(kx1, (B, T, d_in), jnp.float32)
    lens = jnp.array([16, 12], jnp.int32)
    m1 = Conv1dPallas(d_in, d_hid, n_layers, K, pad="same", key=kp1)
    out1, lens1 = m1(feats, lens)
    out1 = jax.block_until_ready(out1)
    ref1 = _reference(feats, m1.weights, m1.biases, n_layers, K)
    assert out1.shape == (B, T, d_hid), out1.shape
    assert jnp.allclose(out1, ref1, atol=1e-4, rtol=1e-4), "mismatch (test 1)"
    assert jnp.array_equal(lens1, lens)

    # ---- Test 2: multi-tile time grid with halo, deeper stack, f32 -----------
    B2, T2, n_l2 = 2, 50, 3
    feats2 = jax.random.normal(kx2, (B2, T2, d_in), jnp.float32)
    lens2 = jnp.array([50, 37], jnp.int32)
    m2 = Conv1dPallas(d_in, d_hid, n_l2, K, pad="same", key=kp2, time_tile=16)
    out2, _ = m2(feats2, lens2)
    out2 = jax.block_until_ready(out2)
    ref2 = _reference(feats2, m2.weights, m2.biases, n_l2, K)
    assert out2.shape == (B2, T2, d_hid), out2.shape
    assert jnp.allclose(out2, ref2, atol=1e-4, rtol=1e-4), "mismatch (test 2)"

    # ---- Test 3: bf16 matmul operands, f32 accumulate/epilogue ---------------
    m3 = Conv1dPallas(d_in, d_hid, n_l2, K, pad="same", key=kp2,
                      compute_dtype=jnp.bfloat16, time_tile=16)
    out3, _ = m3(feats2, lens2)
    out3 = jax.block_until_ready(out3)
    assert out3.dtype == feats2.dtype
    assert jnp.allclose(out3, ref2, atol=1e-1, rtol=1e-1), "mismatch (test 3, bf16)"

    print("KERNEL_OK")
</pallas_src>

<mosaic_0001>
module attributes {stable_mosaic.version = 11 : i64} {
  func.func @kernel(%arg0: i32, %arg1: i32, %arg2: memref<1x16x8xf32, #tpu.memory_space<vmem>>, %arg3: memref<1x1x4x8xf32, #tpu.memory_space<vmem>>, %arg4: memref<3x8x16xf32, #tpu.memory_space<vmem>>, %arg5: memref<1x3x16x16xf32, #tpu.memory_space<vmem>>, %arg6: memref<2x1x16xf32, #tpu.memory_space<vmem>>, %arg7: memref<1x16x16xf32, #tpu.memory_space<vmem>>, %arg8: memref<20x8xf32, #tpu.memory_space<vmem>>, %arg9: memref<18x16xf32, #tpu.memory_space<vmem>>, %arg10: memref<18x16xf32, #tpu.memory_space<vmem>>) attributes {dimension_semantics = [#tpu.dimension_semantics<parallel>, #tpu.dimension_semantics<parallel>], iteration_bounds = array<i64: 2, 1>, scalar_prefetch = 0 : i64, scratch_operands = 3 : i64, tpu.core_type = #tpu.core_type<tc>, window_params = [{transform_indices = @transform_0, window_bounds = array<i64: 1, 16, 8>}, {transform_indices = @transform_1, window_bounds = array<i64: 1, 1, 4, 8>}, {pipeline_mode = #tpu.pipeline_mode<synchronous>, transform_indices = @transform_2, window_bounds = array<i64: 3, 8, 16>}, {pipeline_mode = #tpu.pipeline_mode<synchronous>, transform_indices = @transform_3, window_bounds = array<i64: 1, 3, 16, 16>}, {pipeline_mode = #tpu.pipeline_mode<synchronous>, transform_indices = @transform_4, window_bounds = array<i64: 2, 1, 16>}, {transform_indices = @transform_5, window_bounds = array<i64: 1, 16, 16>}]} {
    %c0 = arith.constant 0 : index
    %c0_0 = arith.constant 0 : index
    %c0_1 = arith.constant 0 : index
    %0 = vector.load %arg2[%c0, %c0_0, %c0_1] : memref<1x16x8xf32, #tpu.memory_space<vmem>>, vector<1x16x8xf32>
    %1 = vector.shape_cast %0 : vector<1x16x8xf32> to vector<16x8xf32>
    %c0_2 = arith.constant 0 : index
    %c0_3 = arith.constant 0 : index
    %2 = vector.load %arg8[%c0_2, %c0_3] : memref<20x8xf32, #tpu.memory_space<vmem>>, vector<16x8xf32>
    tpu.vector_store %arg8[%c0_2, %c0_3], %1 {strides = array<i32>} : memref<20x8xf32, #tpu.memory_space<vmem>>, vector<16x8xf32>,
    %c0_4 = arith.constant 0 : index
    %c0_5 = arith.constant 0 : index
    %c0_6 = arith.constant 0 : index
    %c0_7 = arith.constant 0 : index
    %3 = vector.load %arg3[%c0_4, %c0_5, %c0_6, %c0_7] : memref<1x1x4x8xf32, #tpu.memory_space<vmem>>, vector<1x1x4x8xf32>
    %4 = vector.shape_cast %3 : vector<1x1x4x8xf32> to vector<4x8xf32>
    %c16 = arith.constant 16 : index
    %c0_8 = arith.constant 0 : index
    %5 = vector.load %arg8[%c16, %c0_8] : memref<20x8xf32, #tpu.memory_space<vmem>>, vector<4x8xf32>
    tpu.vector_store %arg8[%c16, %c0_8], %4 {strides = array<i32>} : memref<20x8xf32, #tpu.memory_space<vmem>>, vector<4x8xf32>,
    %cst = arith.constant 0.000000e+00 : f32
    %6 = vector.broadcast %cst : f32 to vector<18x16xf32>
    %c0_9 = arith.constant 0 : index
    %c0_10 = arith.constant 0 : index
    %7 = vector.load %arg8[%c0_9, %c0_10] : memref<20x8xf32, #tpu.memory_space<vmem>>, vector<18x8xf32>
    %c0_11 = arith.constant 0 : index
    %c0_12 = arith.constant 0 : index
    %c0_13 = arith.constant 0 : index
    %8 = vector.load %arg4[%c0_11, %c0_12, %c0_13] : memref<3x8x16xf32, #tpu.memory_space<vmem>>, vector<1x8x16xf32>
    %9 = vector.shape_cast %8 : vector<1x8x16xf32> to vector<8x16xf32>
    %cst_14 = arith.constant dense<0.000000e+00> : vector<18x16xf32>
    %10 = tpu.matmul %7, %9, %cst_14 {dimension_numbers = #tpu.dot_dimension_numbers<[1], [0], [0], [1], [0, 0, 1, 1], [], []>} : vector<18x8xf32>, vector<8x16xf32>, vector<18x16xf32> -> vector<18x16xf32>
    %11 = arith.addf %6, %10 : vector<18x16xf32>
    %c1 = arith.constant 1 : index
    %c0_15 = arith.constant 0 : index
    %12 = vector.load %arg8[%c1, %c0_15] : memref<20x8xf32, #tpu.memory_space<vmem>>, vector<18x8xf32>
    %c1_16 = arith.constant 1 : index
    %c0_17 = arith.constant 0 : index
    %c0_18 = arith.constant 0 : index
    %13 = vector.load %arg4[%c1_16, %c0_17, %c0_18] : memref<3x8x16xf32, #tpu.memory_space<vmem>>, vector<1x8x16xf32>
    %14 = vector.shape_cast %13 : vector<1x8x16xf32> to vector<8x16xf32>
    %cst_19 = arith.constant dense<0.000000e+00> : vector<18x16xf32>
    %15 = tpu.matmul %12, %14, %cst_19 {dimension_numbers = #tpu.dot_dimension_numbers<[1], [0], [0], [1], [0, 0, 1, 1], [], []>} : vector<18x8xf32>, vector<8x16xf32>, vector<18x16xf32> -> vector<18x16xf32>
    %16 = arith.addf %11, %15 : vector<18x16xf32>
    %c2 = arith.constant 2 : index
    %c0_20 = arith.constant 0 : index
    %17 = vector.load %arg8[%c2, %c0_20] : memref<20x8xf32, #tpu.memory_space<vmem>>, vector<18x8xf32>
    %c2_21 = arith.constant 2 : index
    %c0_22 = arith.constant 0 : index
    %c0_23 = arith.constant 0 : index
    %18 = vector.load %arg4[%c2_21, %c0_22, %c0_23] : memref<3x8x16xf32, #tpu.memory_space<vmem>>, vector<1x8x16xf32>
    %19 = vector.shape_cast %18 : vector<1x8x16xf32> to vector<8x16xf32>
    %cst_24 = arith.constant dense<0.000000e+00> : vector<18x16xf32>
    %20 = tpu.matmul %17, %19, %cst_24 {dimension_numbers = #tpu.dot_dimension_numbers<[1], [0], [0], [1], [0, 0, 1, 1], [], []>} : vector<18x8xf32>, vector<8x16xf32>, vector<18x16xf32> -> vector<18x16xf32>
    %21 = arith.addf %16, %20 : vector<18x16xf32>
    %c0_25 = arith.constant 0 : index
    %c0_26 = arith.constant 0 : index
    %c0_27 = arith.constant 0 : index
    %22 = vector.load %arg6[%c0_25, %c0_26, %c0_27] : memref<2x1x16xf32, #tpu.memory_space<vmem>>, vector<1x1x16xf32>
    %23 = vector.shape_cast %22 : vector<1x1x16xf32> to vector<1x16xf32>
    %24 = vector.broadcast %23 : vector<1x16xf32> to vector<18x16xf32>
    %25 = arith.addf %21, %24 : vector<18x16xf32>
    %cst_28 = arith.constant 0.000000e+00 : f32
    %26 = vector.broadcast %cst_28 : f32 to vector<18x16xf32>
    %27 = arith.maximumf %25, %26 : vector<18x16xf32>
    %c0_29 = arith.constant 0 : index
    %c0_30 = arith.constant 0 : index
    %28 = vector.load %arg9[%c0_29, %c0_30] : memref<18x16xf32, #tpu.memory_space<vmem>>, vector<18x16xf32>
    tpu.vector_store %arg9[%c0_29, %c0_30], %27 {strides = array<i32>} : memref<18x16xf32, #tpu.memory_space<vmem>>, vector<18x16xf32>,
    %cst_31 = arith.constant 0.000000e+00 : f32
    %29 = vector.broadcast %cst_31 : f32 to vector<16x16xf32>
    %c0_32 = arith.constant 0 : index
    %c0_33 = arith.constant 0 : index
    %30 = vector.load %arg9[%c0_32, %c0_33] : memref<18x16xf32, #tpu.memory_space<vmem>>, vector<16x16xf32>
    %c0_34 = arith.constant 0 : index
    %c0_35 = arith.constant 0 : index
    %c0_36 = arith.constant 0 : index
    %c0_37 = arith.constant 0 : index
    %31 = vector.load %arg5[%c0_34, %c0_35, %c0_36, %c0_37] : memref<1x3x16x16xf32, #tpu.memory_space<vmem>>, vector<1x1x16x16xf32>
    %32 = vector.shape_cast %31 : vector<1x1x16x16xf32> to vector<16x16xf32>
    %cst_38 = arith.constant dense<0.000000e+00> : vector<16x16xf32>
    %33 = tpu.matmul %30, %32, %cst_38 {dimension_numbers = #tpu.dot_dimension_numbers<[1], [0], [0], [1], [0, 0, 1, 1], [], []>} : vector<16x16xf32>, vector<16x16xf32>, vector<16x16xf32> -> vector<16x16xf32>
    %34 = arith.addf %29, %33 : vector<16x16xf32>
    %c1_39 = arith.constant 1 : index
    %c0_40 = arith.constant 0 : index
    %35 = vector.load %arg9[%c1_39, %c0_40] : memref<18x16xf32, #tpu.memory_space<vmem>>, vector<16x16xf32>
    %c0_41 = arith.constant 0 : index
    %c1_42 = arith.constant 1 : index
    %c0_43 = arith.constant 0 : index
    %c0_44 = arith.constant 0 : index
    %36 = vector.load %arg5[%c0_41, %c1_42, %c0_43, %c0_44] : memref<1x3x16x16xf32, #tpu.memory_space<vmem>>, vector<1x1x16x16xf32>
    %37 = vector.shape_cast %36 : vector<1x1x16x16xf32> to vector<16x16xf32>
    %cst_45 = arith.constant dense<0.000000e+00> : vector<16x16xf32>
    %38 = tpu.matmul %35, %37, %cst_45 {dimension_numbers = #tpu.dot_dimension_numbers<[1], [0], [0], [1], [0, 0, 1, 1], [], []>} : vector<16x16xf32>, vector<16x16xf32>, vector<16x16xf32> -> vector<16x16xf32>
    %39 = arith.addf %34, %38 : vector<16x16xf32>
    %c2_46 = arith.constant 2 : index
    %c0_47 = arith.constant 0 : index
    %40 = vector.load %arg9[%c2_46, %c0_47] : memref<18x16xf32, #tpu.memory_space<vmem>>, vector<16x16xf32>
    %c0_48 = arith.constant 0 : index
    %c2_49 = arith.constant 2 : index
    %c0_50 = arith.constant 0 : index
    %c0_51 = arith.constant 0 : index
    %41 = vector.load %arg5[%c0_48, %c2_49, %c0_50, %c0_51] : memref<1x3x16x16xf32, #tpu.memory_space<vmem>>, vector<1x1x16x16xf32>
    %42 = vector.shape_cast %41 : vector<1x1x16x16xf32> to vector<16x16xf32>
    %cst_52 = arith.constant dense<0.000000e+00> : vector<16x16xf32>
    %43 = tpu.matmul %40, %42, %cst_52 {dimension_numbers = #tpu.dot_dimension_numbers<[1], [0], [0], [1], [0, 0, 1, 1], [], []>} : vector<16x16xf32>, vector<16x16xf32>, vector<16x16xf32> -> vector<16x16xf32>
    %44 = arith.addf %39, %43 : vector<16x16xf32>
    %c1_53 = arith.constant 1 : index
    %c0_54 = arith.constant 0 : index
    %c0_55 = arith.constant 0 : index
    %45 = vector.load %arg6[%c1_53, %c0_54, %c0_55] : memref<2x1x16xf32, #tpu.memory_space<vmem>>, vector<1x1x16xf32>
    %46 = vector.shape_cast %45 : vector<1x1x16xf32> to vector<1x16xf32>
    %47 = vector.broadcast %46 : vector<1x16xf32> to vector<16x16xf32>
    %48 = arith.addf %44, %47 : vector<16x16xf32>
    %cst_56 = arith.constant 0.000000e+00 : f32
    %49 = vector.broadcast %cst_56 : f32 to vector<16x16xf32>
    %50 = arith.maximumf %48, %49 : vector<16x16xf32>
    %c0_57 = arith.constant 0 : index
    %c0_58 = arith.constant 0 : index
    %c0_59 = arith.constant 0 : index
    %51 = vector.load %arg7[%c0_57, %c0_58, %c0_59] : memref<1x16x16xf32, #tpu.memory_space<vmem>>, vector<1x16x16xf32>
    %52 = vector.shape_cast %51 : vector<1x16x16xf32> to vector<16x16xf32>
    %53 = vector.shape_cast %50 : vector<16x16xf32> to vector<1x16x16xf32>
    tpu.vector_store %arg7[%c0_57, %c0_58, %c0_59], %53 {strides = array<i32>} : memref<1x16x16xf32, #tpu.memory_space<vmem>>, vector<1x16x16xf32>,
    return
  }
  func.func @transform_0(%arg0: i32, %arg1: i32) -> (i32, i32, i32) {
    %c0_i32 = arith.constant 0 : i32
    %c0_i32_0 = arith.constant 0 : i32
    return %arg0, %arg1, %c0_i32 : i32, i32, i32
  }
  func.func @transform_1(%arg0: i32, %arg1: i32) -> (i32, i32, i32, i32) {
    %c0_i32 = arith.constant 0 : i32
    %c0_i32_0 = arith.constant 0 : i32
    %c0_i32_1 = arith.constant 0 : i32
    return %arg0, %arg1, %c0_i32, %c0_i32_0 : i32, i32, i32, i32
  }
  func.func @transform_2(%arg0: i32, %arg1: i32) -> (i32, i32, i32) {
    %c0_i32 = arith.constant 0 : i32
    %c0_i32_0 = arith.constant 0 : i32
    %c0_i32_1 = arith.constant 0 : i32
    %c0_i32_2 = arith.constant 0 : i32
    return %c0_i32, %c0_i32_0, %c0_i32_1 : i32, i32, i32
  }
  func.func @transform_3(%arg0: i32, %arg1: i32) -> (i32, i32, i32, i32) {
    %c0_i32 = arith.constant 0 : i32
    %c0_i32_0 = arith.constant 0 : i32
    %c0_i32_1 = arith.constant 0 : i32
    %c0_i32_2 = arith.constant 0 : i32
    %c0_i32_3 = arith.constant 0 : i32
    return %c0_i32, %c0_i32_0, %c0_i32_1, %c0_i32_2 : i32, i32, i32, i32
  }
  func.func @transform_4(%arg0: i32, %arg1: i32) -> (i32, i32, i32) {
    %c0_i32 = arith.constant 0 : i32
    %c0_i32_0 = arith.constant 0 : i32
    %c0_i32_1 = arith.constant 0 : i32
    %c0_i32_2 = arith.constant 0 : i32
    return %c0_i32, %c0_i32_0, %c0_i32_1 : i32, i32, i32
  }
  func.func @transform_5(%arg0: i32, %arg1: i32) -> (i32, i32, i32) {
    %c0_i32 = arith.constant 0 : i32
    %c0_i32_0 = arith.constant 0 : i32
    return %arg0, %arg1, %c0_i32 : i32, i32, i32
  }
}

</mosaic_0001>

<bundles_post_ra>
// kernel: tpu_custom_call.1
= control target key start
LH: loop header
LB: loop body
LE: loop exit
PB: predicated region body
PF: predicated region fallthrough
CT: control target
= control target key end

     0   :  { %10 = vsyncpa [#allocation6], 0  ;;  %s1568_s0 = inlined_call_operand.vmem [shape: f32[2,16,8], index: 0, kind: input, shape index: {}]   ;;  %s1569_s1 = inlined_call_operand.vmem [shape: f32[2,1,4,8], index: 1, kind: input, shape index: {}]   ;;  %s1570_s2 = inlined_call_operand.hbm [shape: f32[3,8,16], index: 2, kind: input, shape index: {}]   ;;  %s1571_s3 = inlined_call_operand.vmem [shape: f32[1,3,16,16], index: 3, kind: input, shape index: {}]   ;;  %s1572_s4 = inlined_call_operand.vmem [shape: f32[2,1,16], index: 4, kind: input, shape index: {}]   ;;  %s1573_s5 = inlined_call_operand.hbm [shape: f32[2,16,16], index: 5, kind: output, shape index: {}]  }
   0x1   :  { %11 = vsyncpa [#allocation7], 0 }
   0x2   :  { %13 = vsyncpa [#allocation7 + $0x1], 0  ;;  %s1358_s18 = smov 0   ;;  %s1360_s19 = smov 0  }
   0x3   :  { %s1362_s20 = smov 0   ;;  %s1364_s21 = smov 0  }
   0x4   :  { %s1366_s22 = smov 0   ;;  %s1368_s23 = smov 0  }
   0x5 LB: > { %s1002_s24 = sadd.s32 4294967295, %s1318_s23   ;;  %s1003_s25 = sadd.s32 4294967294, %s1318_s23   ;;  %s1318_s23 = sphi %s1368_s23, %s19_s23   ;;  %s1314_s22 = sphi %s1366_s22, %s1591_s22   ;;  %s1310_s21 = sphi %s1364_s21, %s1590_s21   ;;  %s1306_s20 = sphi %s1362_s20, %s1589_s20   ;;  %s1302_s19 = sphi %s1360_s19, %s1588_s19   ;;  %s1298_s18 = sphi %s1358_s18, %s1587_s18  }
   0x6   : > { %s31_s26 = sadd.s32 1, %s1314_s22  ;;  %s159_s27 = sadd.s32 1, %s1306_s20 }
   0x7   : > { %p33_p0 = scmp.ge.s32.totalorder %s31_s26, 2  ;;  %p169_p1 = scmp.ne.s32.totalorder %s1306_s20, %s1302_s19 }
   0x8   : > { %p170_p2 = scmp.eq.s32.totalorder %s1002_s24, 1  ;;  %p175_p3 = scmp.ne.s32.totalorder %s1302_s19, %s1298_s18 }
   0x9   : > { %s1593_s26 = smov (%p33_p0, %s31_s26), 0  ;;  %p176_p5 = scmp.eq.s32.totalorder %s1003_s25, 1 }
   0xa   : > { %p1398_p4 = por %p170_p2, %p169_p1  ;;  %s154_s29 = ssub.s32 %s1314_s22, %s1593_s26 }
   0xb   : > { %p1004_p6 = scmp.ge.s32.totalorder %s1318_s23, 1  ;;  %p157_p7 = scmp.eq.s32.totalorder %s154_s29, 0 }
   0xc   : > { %s1578_s28 = scalar_select %p1398_p4, 1, 0 }
   0xd   : > { %p1405_p8 = por %p176_p5, %p175_p3  ;;  %p183_p9 = scmp.lt.s32.totalorder %s1318_s23, 3 }
   0xe   : > { %s1411_s6 = scalar_select %p157_p7, %s1306_s20, %s159_s27  }
   0xf   : > { %s1579_s30 = scalar_select %p1405_p8, 1, 0 }
  0x10   : > { %p1413_p10 = pnand %p1004_p6, %p183_p9  ;;  %p1417_p11 = scmp.eq.s32.totalorder %s1002_s24, 0 }
  0x11   : > { %s1320_s9 = smov [#allocation5]   ;;  %s1208_s14 = scalar_lea.hbm %s1570_s2, 384 }
  0x12   : > { %s1580_s7 = scalar_select %p1413_p10, 1, 0 }
  0x13   : > { %s1581_s8 = scalar_select %p1417_p11, 1, 0 }
  0x14   : > { %p1142_p12 = pneg %p1413_p10  ;;  %s195_s10 = sshll.u32 %s1320_s9, 4  ;;  %s196_s10 = int_to_ptr.vmem [resolvable:$true] %s195_s10 }
  0x15   : > { %p1209_p0 = scmp.ne.s32.totalorder %s1570_s2, %s1208_s14  ;;  %p1215_p5 = scmp.lt.u32.totalorder %s1208_s14, %s1570_s2 }
  0x16   : > { %p1425_p13 = pnand %p1417_p11, %p1142_p12 }
  0x18   : > { %p1210_p1 = pneg %p1425_p13 }
  0x1a   : > { %p1211_p2 = pnand %p1210_p1, %p1209_p0 }
  0x1c   : > { %p1212_p3 = pneg %p1211_p2 }
  0x1e   : > { %p1217_p6 = pnand %p1215_p5, %p1212_p3 }
  0x20   : > { %1220 = shalt.err (!%p1217_p6)
}
  0x21   : > { %s1221_s25 = scalar_lea.vmem %s196_s10, 384  ;;  %p1229_p8 = scmp.lt.s32.totalorder %s196_s10, %s196_s10 }
  0x22   : > { %p1222_p7 = scmp.ne.s32.totalorder %s196_s10, %s1221_s25  ;;  %p1230_p4 = scmp.lt.s32.totalorder %s1221_s25, %s1221_s25 }
  0x24   : > { %p1224_p9 = pnand %p1222_p7, %p1210_p1  ;;  %p1231_p11 = por %p1230_p4, %p1229_p8 }
  0x26   : > { %p1225_p12 = pneg %p1224_p9 }
  0x28   : > { %p1232_p10 = pnand %p1231_p11, %p1225_p12 }
  0x2a   : > { %1235 = shalt.err (!%p1232_p10)
}
  0x2b   : > { %s1321_s27 = smov 128   ;;  %s1322_s29 = smov 8  }
  0x2c   : > { %1145 = dma.hbm_to_vmem [thread:$0]  (!%p1425_p13), %s1570_s2, 384, %s196_s10, [#allocation6], %s1321_s27, %s1321_s27, %s1322_s29  }
  0x2d   : > { %p1583_p0 = scmp.ne.s32.totalorder %s1580_s7, 0 }
  0x2e   : > { %p1584_p2 = scmp.ne.s32.totalorder (!%p1583_p0), %s1581_s8, 0 }
  0x2f   : > { %240 = sbr.rel (%p1583_p0) target bundleno = 565 (0x235), region = 40 }
  0x36   : > { %1289 = dma.done.wait (%p1584_p2), [#allocation6], 384  }
  0x37   : > { %1291 = vsyncadd (%p1584_p2), [#allocation6], 4294966912  ;;  %p280_p4 = scmp.lt.s32.totalorder %s1310_s21, 1  ;;  %v1323_v0 = vmov 0.0   ;;  %vm1324_vm0 = vmmov 0   ;;  %vm299_vm1 = vcmask 64512  }
  0x38   : > { %1066 = vmatprep.subr.mxu0 %v1323_v0  ;;  %1077 = vmatprep.subr.mxu1 %v1323_v0  ;;  %vm303_vm2 = vcmask 60416   ;;  %v313_v1 = vld [vmem:[#allocation5 + $0x8] sm:$0xff]  ;;  %v308_v2 = vld [vmem:[#allocation5] sm:$0xff]  ;;  %v496_v7 = vld [vmem:[#allocation5 + $0x10] sm:$0xff]  ;;  %vm602_vm3 = vcmask 130048   ;;  %vm605_vm4 = vcmask 123904  }
  0x39   : > { %1068 = vmatprep.mubr.msk.f32.mxu0 %vm1324_vm0, %v1323_v0  ;;  %1079 = vmatprep.mubr.msk.f32.mxu1 %vm1324_vm0, %v1323_v0  ;;  %s281_s10 = scalar_select %p280_p4, %s1310_s21, 1  ;;  %v1023_v16 = vld [vmem:[%s1571_s3 + $0x10] sm:$0xff]  ;;  %v1024_v17 = vld [vmem:[%s1571_s3 + $0x18] sm:$0xff]  ;;  %v609_v19 = vld [vmem:[%s1571_s3] sm:$0xff] }
  0x3a   : > { %1067 = vmatpush3.msra.mxu0 %v313_v1  ;;  %1078 = vmatpush3.msra.mxu1 %v308_v2  ;;  %v1120_v18 = vpack.c.bf16 %v1024_v17, %v1023_v16  ;;  %v610_v20 = vld [vmem:[%s1571_s3 + $0x8] sm:$0xff]  ;;  %v1022_v38 = vld [vmem:[%s1572_s4] ss:$0 sm:$0xff]  ;;  %v1034_v62 = vld [vmem:[%s1572_s4 + $0x1] ss:$0 sm:$0xff]  ;;  %s1041_s12 = sshll.u32 %s1310_s21, 8 }
  0x3b   : > { %s1040_s7 = sshll.u32 %s281_s10, 4  ;;  %s1012_s11 = sshll.u32 %s281_s10, 2  ;;  %1088 = vmatprep.subr.mxu0 %v1323_v0  ;;  %v1124_v21 = vpack.c.bf16 %v610_v20, %v609_v19  ;;  %v1029_v54 = vld [vmem:[%s1571_s3 + $0x20] sm:$0xff]  ;;  %v1030_v55 = vld [vmem:[%s1571_s3 + $0x28] sm:$0xff] }
  0x3c   : > { %s287_s15 = scalar_lea.vmem %s1568_s0, %s1040_s7  ;;  %s295_s17 = scalar_lea.vmem %s1569_s1, %s1012_s11  ;;  %1121 = vmatprep.subr.bf16.mxu1 %v1120_v18  ;;  %v1128_v56 = vpack.c.bf16 %v1030_v55, %v1029_v54 }
  0x3d   : > { %v297_v3 = vld [vmem:[%s287_s15] sm:$0xff]  ;;  %v298_v4 = vld [vmem:[%s287_s15 + $0x8] sm:$0xff]  ;;  %s1516_s11 = scalar_lea.hbm %s1573_s5, %s1041_s12  ;;  %p1585_p10 = scmp.ne.s32.totalorder %s1578_s28, 0 }
  0x3e   : > { %300 = vst.msk [vmem:[#allocation2] sm:$0xff] %vm299_vm1, %v297_v3  ;;  %v302_v5 = vld [vmem:[%s295_s17] sm:$0xf]  ;;  %301 = vst.msk [vmem:[#allocation2 + $0x8] sm:$0xff] %vm299_vm1, %v298_v4  ;;  %s276_s17 = sand.u32 1, %s1302_s19   ;;  %s1325_s14 = smov [#allocation8]  }
  0x3f   : > { %304 = vst.msk [vmem:[#allocation2 + $0x10] sm:$0xf] %vm303_vm2, %v302_v5  ;;  %s1009_s24 = sshll.u32 %s276_s17, 4  ;;  %s1522_s21 = scalar_lea.sflag [#allocation7], %s276_s17 }
  0x40   : > { %s278_s29 = scalar_lea.vmem [#allocation8], %s1009_s24  ;;  %s1240_s15 = sshll.u32 %s1325_s14, 4  ;;  %s1241_s15 = int_to_ptr.vmem [resolvable:$false] %s1240_s15 }
  0x41   : > { %s896_s9 = sshll.u32 %s278_s29, 4  ;;  %s1242_s8 = scalar_lea.vmem %s1241_s15, 512  ;;  %s1518_s9 = int_to_ptr.vmem [resolvable:$true] %s896_s9 }
  0x42   : > { %s1236_s13 = scalar_lea.vmem %s1518_s9, 256  ;;  %p1243_p1 = scmp.lt.s32.totalorder %s1518_s9, %s1241_s15 }
  0x43   : > { %p1237_p8 = scmp.ne.s32.totalorder %s1518_s9, %s1236_s13  ;;  %p1244_p3 = scmp.lt.s32.totalorder %s1242_s8, %s1236_s13 }
  0x45   : > { %v305_v6 = vld [vmem:[#allocation2] sm:$0xff]  ;;  %v306_v9 = vld [vmem:[#allocation2 + $0x8] sm:$0xff]  ;;  %p1238_p11 = pnand %p1237_p8, %p1585_p10  ;;  %p1245_p5 = por %p1244_p3, %p1243_p1 }
  0x46   : > { %v309_v8 = vld [vmem:[#allocation2 + $0x1] sm:$0xff]  ;;  %1080 = vmatmul.mubr.msk.f32.vlgmr.msra.gmra.mrb[0].mxu1 %vm299_vm1, %v305_v6  ;;  %v310_v10 = vld [vmem:[#allocation2 + $0x9] sm:$0xff]  ;;  %v311_v12 = vld [vmem:[#allocation2 + $0x11] sm:$0x3] }
  0x47   : > { %1069 = vmatmul.mubr.msk.f32.vlgmr.msra.gmra.mrb[0].mxu0 %vm299_vm1, %v309_v8  ;;  %1082 = vmatprep.mubr.msk.f32.mxu1 %vm1324_vm0, %v1323_v0  ;;  %v307_v11 = vld [vmem:[#allocation2 + $0x10] sm:$0x3]  ;;  %v492_v13 = vld [vmem:[#allocation2 + $0x2] sm:$0xff]  ;;  %v494_v15 = vld [vmem:[#allocation2 + $0x12] sm:$0x3]  ;;  %p1239_p13 = pneg %p1238_p11 }
  0x48   : > { %1089 = vmatpush3.msra.mxu0 %v496_v7  ;;  %1071 = vmatprep.mubr.msk.f32.mxu0 %vm1324_vm0, %v1323_v0  ;;  %v493_v14 = vld [vmem:[#allocation2 + $0xa] sm:$0xff] }
  0x49   : > { %1123 = vmatpush3.bf16.msra.mxu1 %v1120_v18  ;;  %p1246_p6 = pnand %p1245_p5, %p1239_p13 }
  0x4a   : > { %1083 = vmatmul.mubr.msk.f32.gmra.mrb[2].mxu1 %vm299_vm1, %v306_v9  ;;  %1125 = vmatprep.subr.bf16.mxu1 %v1124_v21 }
  0x4b   : > { %1072 = vmatmul.mubr.msk.f32.gmra.mrb[2].mxu0 %vm299_vm1, %v310_v10  ;;  %1085 = vmatprep.mubr.msk.f32.mxu1 %vm1324_vm0, %v1323_v0 }
  0x4c   : > { %1074 = vmatprep.mubr.msk.f32.mxu0 %vm1324_vm0, %v1323_v0 }
  0x4e   : > { %1086 = vmatmul.mubr.msk.f32.gmra.mrb[4].mxu1 %vm299_vm1, %v307_v11 }
  0x4f   : > { %1075 = vmatmul.mubr.msk.f32.gmra.mrb[4].mxu0 %vm299_vm1, %v311_v12 }
  0x50   : > { %1090 = vmatprep.mubr.msk.f32.mxu0 %vm1324_vm0, %v1323_v0 }
  0x53   : > { %1091 = vmatmul.mubr.msk.f32.vlgmr.msra.gmra.mrb[6].mxu0 %vm299_vm1, %v492_v13 }
  0x54   : > { %1093 = vmatprep.mubr.msk.f32.mxu0 %vm1324_vm0, %v1323_v0 }
  0x57   : > { %1094 = vmatmul.mubr.msk.f32.gmra.mrb[8].mxu0 %vm299_vm1, %v493_v14 }
  0x58   : > { %1096 = vmatprep.mubr.msk.f32.mxu0 %vm1324_vm0, %v1323_v0 }
  0x5b   : > { %1097 = vmatmul.mubr.msk.f32.gmra.mrb[10].mxu0 %vm299_vm1, %v494_v15 }
 0x119   : > { %v478_v22 = vpop.f32.mrb[0].mxu1 }
 0x11a   : > { %v389_v23 = vpop.f32.mrb[0].mxu0  ;;  %v1081_v24 = vpop.f32.mrb[1].mxu1 }
 0x11b   : > { %v479_v25 = vadd.f32 %v478_v22, %v389_v23  ;;  %v1070_v26 = vpop.f32.mrb[1].mxu0 }
 0x11d   : > { %v483_v27 = vpop.f32.mrb[2].mxu1 }
 0x11e   : > { %v394_v28 = vpop.f32.mrb[2].mxu0  ;;  %v1084_v29 = vpop.f32.mrb[3].mxu1 }
 0x11f   : > { %v484_v30 = vadd.f32 %v483_v27, %v394_v28  ;;  %v1073_v31 = vpop.f32.mrb[3].mxu0 }
 0x121   : > { %v488_v32 = vpop.f32.mrb[4].mxu1 }
 0x122   : > { %v399_v33 = vpop.f32.mrb[4].mxu0  ;;  %v1087_v34 = vpop.f32.mrb[5].mxu1 }
 0x123   : > { %v489_v35 = vadd.f32 %v488_v32, %v399_v33  ;;  %v1076_v36 = vpop.f32.mrb[5].mxu0 }
 0x126   : > { %v572_v37 = vpop.f32.mrb[6].mxu0 }
 0x127   : > { %v586_v39 = vadd.f32 %v572_v37, %v479_v25  ;;  %v1092_v40 = vpop.f32.mrb[7].mxu0 }
 0x129   : > { %v596_v41 = vadd.f32 %v1022_v38, %v586_v39 }
 0x12a   : > { %v577_v42 = vpop.f32.mrb[8].mxu0 }
 0x12b   : > { %v599_v43 = vmax.f32 %v596_v41, 0.0  ;;  %v587_v44 = vadd.f32 %v577_v42, %v484_v30  ;;  %v1095_v45 = vpop.f32.mrb[9].mxu0 }
 0x12d   : > { %603 = vst.msk [vmem:[#allocation3] sm:$0xff] %vm602_vm3, %v599_v43  ;;  %v597_v46 = vadd.f32 %v1022_v38, %v587_v44 }
 0x12e   : > { %v582_v47 = vpop.f32.mrb[10].mxu0 }
 0x12f   : > { %v600_v48 = vmax.f32 %v597_v46, 0.0  ;;  %v588_v49 = vadd.f32 %v582_v47, %v489_v35  ;;  %v1098_v50 = vpop.f32.mrb[11].mxu0 }
 0x131   : > { %604 = vst.msk [vmem:[#allocation3 + $0x8] sm:$0xff] %vm602_vm3, %v600_v48  ;;  %v598_v51 = vadd.f32 %v1022_v38, %v588_v49 }
 0x133   : > { %v601_v52 = vmax.f32 %v598_v51, 0.0 }
 0x134   : > { %v607_v58 = vld [vmem:[#allocation3] sm:$0xff] }
 0x135   : > { %606 = vst.msk [vmem:[#allocation3 + $0x10] sm:$0x3] %vm605_vm4, %v601_v52 }
 0x138   : > { %v611_v53 = vld [vmem:[#allocation3 + $0x1] sm:$0xff] }
 0x139   : > { %1103 = vmatprep.mubr.msk.f32.mxu1 %vm602_vm3, %v611_v53  ;;  %v608_v59 = vld [vmem:[#allocation3 + $0x8] sm:$0xff] }
 0x13a   : > { %v778_v60 = vld [vmem:[#allocation3 + $0x2] sm:$0xff] }
 0x13c   : > { %v612_v57 = vld [vmem:[#allocation3 + $0x9] sm:$0xff] }
 0x13d   : > { %1104 = vmatmul.mubr.msk.f32.vlgmr.msra.gmra.mrb[6].mxu1 %vm602_vm3, %v612_v57  ;;  %v779_v61 = vld [vmem:[#allocation3 + $0xa] sm:$0xff] }
 0x13e   : > { %1127 = vmatpush3.bf16.msra.mxu1 %v1124_v21  ;;  %1110 = vmatprep.mubr.msk.f32.mxu1 %vm602_vm3, %v607_v58 }
 0x13f   : > { %1129 = vmatprep.subr.bf16.mxu1 %v1128_v56 }
 0x145   : > { %1111 = vmatmul.mubr.msk.f32.vlgmr.msra.gmra.mrb[6].mxu1 %vm602_vm3, %v608_v59 }
 0x146   : > { %1131 = vmatpush3.bf16.msra.mxu1 %v1128_v56  ;;  %1117 = vmatprep.mubr.msk.f32.mxu1 %vm602_vm3, %v778_v60 }
 0x14d   : > { %1118 = vmatmul.mubr.msk.f32.vlgmr.msra.gmra.mrb[6].mxu1 %vm602_vm3, %v779_v61 }
 0x220   : > { %v1119_v63 = vpop.f32.mrb[6].mxu1 }
 0x221   : > { %v875_v0 = vadd.f32 %v1119_v63, %v1034_v62  ;;  %v855_v1 = vpop.f32.mrb[7].mxu1 }
 0x222   : > { %v874_v2 = vadd.f32 %v1034_v62, %v855_v1 }
 0x223   : > { %v877_v3 = vmax.f32 %v875_v0, 0.0 }
 0x224   : > { %v876_v4 = vmax.f32 %v874_v2, 0.0 }
 0x225   : > { %879 = vst.msk [vmem:[%s278_s29 + $0x8] sm:$0xff] %vm602_vm3, %v877_v3 }
 0x226   : > { %878 = vst.msk [vmem:[%s278_s29] sm:$0xff] %vm602_vm3, %v876_v4 }
 0x227   : > { %1249 = shalt.err (!%p1246_p6)
}
 0x228   : > { %s1250_s16 = scalar_lea.hbm %s1516_s11, 256  ;;  %s1254_s25 = scalar_lea.hbm %s1573_s5, 512 }
 0x229   : > { %p1251_p7 = scmp.ne.s32.totalorder %s1516_s11, %s1250_s16  ;;  %p1255_p0 = scmp.lt.u32.totalorder %s1516_s11, %s1573_s5 }
 0x22a   : > { %p1256_p2 = scmp.lt.u32.totalorder %s1254_s25, %s1250_s16  ;;  %p1258_p8 = scmp.lt.u32.totalorder %s1250_s16, %s1516_s11 }
 0x22b   : > { %p1252_p9 = pnand %p1251_p7, %p1585_p10 }
 0x22c   : > { %p1257_p4 = por %p1256_p2, %p1255_p0 }
 0x22d   : > { %p1253_p12 = pneg %p1252_p9 }
 0x22e   : > { %p1259_p11 = por %p1258_p8, %p1257_p4 }
 0x230   : > { %p1260_p13 = pnand %p1259_p11, %p1253_p12 }
 0x232   : > { %1263 = shalt.err (!%p1260_p13)
}
 0x233   : > { %s1326_s12 = smov 128   ;;  %s1327_s10 = smov 8  }
 0x234   : > { %1140 = dma.vmem_to_hbm [thread:$0]  (%p1585_p10), %s1518_s9, 256, %s1516_s11, %s1522_s21, %s1326_s12, %s1326_s12, %s1327_s10  }
 0x235 PF: > { %p1152_p1 = scmp.ge.s32.totalorder %s1318_s23, 2  ;;  %s911_s7 = sand.u32 1, %s1298_s18  }
 0x236   : > { %p1586_p3 = scmp.ne.s32.totalorder %s1579_s30, 0  ;;  %s912_s13 = scalar_lea.sflag [#allocation7], %s911_s7 }
 0x238   : > { %p1147_p5 = pnand %p1152_p1, %p1586_p3 }
 0x23a   : > { %1293 = dma.done.wait (!%p1147_p5), %s912_s13, 256  }
 0x23b   : > { %1295 = vsyncadd (!%p1147_p5), %s912_s13, 4294967040  ;;  %s19_s23 = sadd.s32 1, %s1318_s23   ;;  %s1587_s18 = smov %s1302_s19 }
 0x23c   : > { %p16_p6 = scmp.ge.s32.totalorder %s19_s23, 4   ;;  %s1588_s19 = smov %s1306_s20 }
 0x23d   : > { %s1589_s20 = smov %s1411_s6  ;;  %s1590_s21 = smov %s1314_s22 }
 0x23e   : > { %s1591_s22 = smov %s1593_s26  ;;  %18 = sbr.rel (!%p16_p6) target bundleno = 5 (0x5), region = 88 }
 0x245   :  { %917 = vsyncpa [#allocation6], 1 }
 0x246   :  { %919 = vsyncpa [#allocation6 + $0x1], 1 }
 0x247   :  { %920 = vsyncpa [#allocation7], 1 }
 0x248   :  { %922 = vsyncpa [#allocation7 + $0x1], 1 }

</bundles_post_ra>
